<compile_context>
chip_gen: v6e
topology: v6e:2x2x1
jax: 0.10.0
libtpu: 0.0.40
codegen_flags: <defaults>
</compile_context>

<pallas_src>
from functools import partial

import numpy as np
import jax
import jax.numpy as jnp
from jax import lax
from jax.experimental import pallas as pl
from jax.experimental.pallas import tpu as pltpu


def _shift_flat(x, d, size):
    """out[..., s] = x[..., (s + d) % size] for static d, via an XLU lane rotation."""
    k = (-d) % size
    if k == 0:
        return x
    return pltpu.roll(x, k, axis=1)


def _fused_dwsep_kernel(x_ref, w_ref, o_ref, *, nb, cin, kh, kw, pad, w_img, s_flat, hw_valid):
    # x_ref: (nb, Cin, S)           H-replicate-padded images, H*W flattened on the lane axis
    # w_ref: (Cout, kh*kw*Cin + 1)  fused depthwise*pointwise weights, last column = fused bias
    # o_ref: (nb, Cout, Ho*Wo)      lane-dense output block
    w = w_ref[...]                                                    # (Cout, K) f32

    # Column index q of every flat position; used for replicate clamping at the W edges.
    col_q = lax.broadcasted_iota(jnp.int32, (cin, s_flat), 1) % w_img
    ones_row = jnp.ones((1, s_flat), jnp.float32)                     # contracts against bias col

    for b in range(nb):                                               # nb is static (1 or N)
        xb = x_ref[b].astype(jnp.float32)                             # cast hoisted out of tap loop
        taps = []
        for i in range(kh):                                           # row offset of the tap
            per_dj = {0: _shift_flat(xb, i * w_img, s_flat)}          # centre column tap (dj = 0)
            for m in range(1, pad + 1):                               # left taps: clamp to col 0
                raw = _shift_flat(xb, i * w_img - m, s_flat)
                per_dj[-m] = jnp.where(col_q < m, per_dj[-(m - 1)], raw)
            for m in range(1, kw - pad):                              # right taps: clamp to col W-1
                raw = _shift_flat(xb, i * w_img + m, s_flat)
                per_dj[m] = jnp.where(col_q >= w_img - m, per_dj[m - 1], raw)
            for j in range(kw):
                taps.append(per_dj[j - pad])
        col = jnp.concatenate(taps + [ones_row], axis=0)              # (kh*kw*Cin + 1, S)
        y = jnp.dot(w, col, preferred_element_type=jnp.float32)       # single MXU matmul, (Cout, S)
        o_ref[b] = y[:, :hw_valid].astype(o_ref.dtype)                # lane-dense (Ho*Wo) store


def depthwise_separable_conv(x_nchw, dw, db, pw, pb, *, padding, batch_block=None):
    """x_nchw: (N, Cin, H, W); dw: (kh, kw, Cin); db: (Cin,); pw: (Cin, Cout); pb: (Cout,)."""
    N, Cin, H, W = x_nchw.shape
    kh, kw, _ = dw.shape
    Cout = pw.shape[1]

    # TODO(synk): only the 'same'-width configuration (kw == 2*padding + 1), which is how the
    # module is used, is supported by the in-kernel replicate clamping along W.
    assert kw == 2 * padding + 1, "expected kw == 2*padding + 1 ('same' width padding)"

    Hp = H + 2 * padding
    Ho = Hp - kh + 1
    Wo = W                       # == W + 2*padding - kw + 1
    hw_valid = Ho * Wo

    # Replicate-pad along H only (W padding is applied inside the kernel). Extra bottom rows
    # round the flattened lane dimension up to a multiple of 128 when that is cheap.
    if 128 % W == 0:
        rows_128 = 128 // W
        Hp_pad = ((Hp + rows_128 - 1) // rows_128) * rows_128
        xh = jnp.pad(x_nchw, ((0, 0), (0, 0), (padding, padding + (Hp_pad - Hp)), (0, 0)),
                     mode="edge")
        S = Hp_pad * W
        x_flat = xh.reshape(N, Cin, S)
    else:
        xh = jnp.pad(x_nchw, ((0, 0), (0, 0), (padding, padding), (0, 0)), mode="edge")
        x_flat = xh.reshape(N, Cin, Hp * W)
        S = ((Hp * W + 127) // 128) * 128
        if S != Hp * W:
            x_flat = jnp.pad(x_flat, ((0, 0), (0, 0), (0, S - Hp * W)))

    # Fuse depthwise into pointwise; append fused bias as the last matmul column.
    wf = dw.astype(jnp.float32)[:, :, :, None] * pw.astype(jnp.float32)[None, None, :, :]
    wf = jnp.transpose(wf, (3, 0, 1, 2)).reshape(Cout, kh * kw * Cin)     # (Cout, kh*kw*Cin)
    b_fused = db.astype(jnp.float32) @ pw.astype(jnp.float32) + pb.astype(jnp.float32)
    w_aug = jnp.concatenate([wf, b_fused[:, None]], axis=1)               # (Cout, kh*kw*Cin + 1)

    # Batch blocking: whole batch per grid step on single-TC chips; one batch element per
    # "parallel" grid step on multi-TC v7x so both TensorCores are used.
    if batch_block is None:
        try:
            kind = jax.devices()[0].device_kind.lower()
        except Exception:
            kind = ""
        multi_tc = ("v7" in kind) or ("tpu7" in kind)
        batch_block = 1 if (multi_tc and N > 1) else N
    assert N % batch_block == 0
    nb = batch_block

    kernel = partial(_fused_dwsep_kernel, nb=nb, cin=Cin, kh=kh, kw=kw, pad=padding,
                     w_img=W, s_flat=S, hw_valid=hw_valid)

    out_flat = pl.pallas_call(
        kernel,
        out_shape=jax.ShapeDtypeStruct((N, Cout, hw_valid), x_nchw.dtype),
        grid_spec=pltpu.PrefetchScalarGridSpec(
            num_scalar_prefetch=0,
            grid=(N // nb,),
            in_specs=[
                pl.BlockSpec((nb, Cin, S), lambda n: (n, 0, 0)),
                pl.BlockSpec((Cout, kh * kw * Cin + 1), lambda n: (0, 0)),
            ],
            out_specs=pl.BlockSpec((nb, Cout, hw_valid), lambda n: (n, 0, 0)),
        ),
        compiler_params=pltpu.CompilerParams(dimension_semantics=("parallel",)),
    )(x_flat, w_aug)

    # (N, Cout, Ho*Wo) -> NCHW; this reshape is free (row-major contiguous).
    return out_flat.reshape(N, Cout, Ho, Wo)


def _reference(x_nchw, dw, db, pw, pb, *, padding):
    """Pure-JAX reference using lax.conv_general_dilated (mirrors PyTorch semantics)."""
    Cin = x_nchw.shape[1]
    xp = jnp.pad(x_nchw, ((0, 0), (0, 0), (padding, padding), (padding, padding)), mode="edge")
    w_dw = jnp.transpose(dw, (2, 0, 1))[:, None, :, :]          # (Cin, 1, kh, kw)
    y = jax.lax.conv_general_dilated(
        xp, w_dw, (1, 1), "VALID",
        dimension_numbers=("NCHW", "OIHW", "NCHW"), feature_group_count=Cin)
    y = y + db.reshape(1, Cin, 1, 1)
    w_pw = jnp.transpose(pw, (1, 0))[:, :, None, None]          # (Cout, Cin, 1, 1)
    z = jax.lax.conv_general_dilated(
        y, w_pw, (1, 1), "VALID", dimension_numbers=("NCHW", "OIHW", "NCHW"))
    return z + pb.reshape(1, -1, 1, 1)


if __name__ == "__main__":
    # DepthwiseConvolution(nin=4, nout=8, kernel_size=3, padding=1, padding_mode='replicate')
    N, Cin, Cout, H, W = 2, 4, 8, 16, 16
    K, PAD = 3, 1

    key = jax.random.PRNGKey(0)
    kx, kdw, kdb, kpw, kpb = jax.random.split(key, 5)

    x = jax.random.normal(kx, (N, Cin, H, W), dtype=jnp.float32)

    # Deterministic parameter init (shapes follow nn.Conv2d; values are synthetic).
    dw = jax.random.normal(kdw, (K, K, Cin), dtype=jnp.float32) * (1.0 / (K * K))
    db = jax.random.normal(kdb, (Cin,), dtype=jnp.float32) * 0.1
    pw = jax.random.normal(kpw, (Cin, Cout), dtype=jnp.float32) * (1.0 / Cin)
    pb = jax.random.normal(kpb, (Cout,), dtype=jnp.float32) * 0.1

    out = depthwise_separable_conv(x, dw, db, pw, pb, padding=PAD)
    out = jax.block_until_ready(out)

    ref = _reference(x, dw, db, pw, pb, padding=PAD)
    assert out.shape == (N, Cout, H, W), out.shape
    np.testing.assert_allclose(np.asarray(out), np.asarray(ref), rtol=1e-4, atol=1e-4)

    print("KERNEL_OK")
</pallas_src>

<mosaic_0001>
module attributes {stable_mosaic.version = 11 : i64} {
  func.func @_fused_dwsep_kernel(%arg0: i32, %arg1: memref<2x4x384xf32, #tpu.memory_space<vmem>>, %arg2: memref<8x37xf32, #tpu.memory_space<vmem>>, %arg3: memref<2x8x256xf32, #tpu.memory_space<vmem>>) attributes {dimension_semantics = [#tpu.dimension_semantics<parallel>], iteration_bounds = array<i64: 1>, scalar_prefetch = 0 : i64, scratch_operands = 0 : i64, tpu.core_type = #tpu.core_type<tc>, window_params = [{transform_indices = @transform_0, window_bounds = array<i64: 2, 4, 384>}, {pipeline_mode = #tpu.pipeline_mode<synchronous>, transform_indices = @transform_1, window_bounds = array<i64: 8, 37>}, {transform_indices = @transform_2, window_bounds = array<i64: 2, 8, 256>}]} {
    %c0 = arith.constant 0 : index
    %c0_0 = arith.constant 0 : index
    %0 = vector.load %arg2[%c0, %c0_0] : memref<8x37xf32, #tpu.memory_space<vmem>>, vector<8x37xf32>
    %1 = tpu.iota {dimensions = array<i32: 1>} : vector<4x384xi32>
    %c16_i32 = arith.constant 16 : i32
    %c0_i32 = arith.constant 0 : i32
    %2 = arith.cmpi eq, %c16_i32, %c0_i32 : i32
    %c1_i32 = arith.constant 1 : i32
    %3 = arith.select %2, %c1_i32, %c16_i32 : i32
    %4 = vector.broadcast %3 : i32 to vector<4x384xi32>
    %5 = arith.remsi %1, %4 : vector<4x384xi32>
    %c0_i32_1 = arith.constant 0 : i32
    %6 = vector.broadcast %c0_i32_1 : i32 to vector<4x384xi32>
    %7 = arith.cmpi ne, %5, %6 : vector<4x384xi32>
    %c0_i32_2 = arith.constant 0 : i32
    %8 = vector.broadcast %c0_i32_2 : i32 to vector<4x384xi32>
    %9 = arith.cmpi slt, %5, %8 : vector<4x384xi32>
    %c0_i32_3 = arith.constant 0 : i32
    %10 = arith.cmpi slt, %3, %c0_i32_3 : i32
    %11 = vector.broadcast %10 : i1 to vector<4x384xi1>
    %12 = vector.broadcast %11 : vector<4x384xi1> to vector<4x384xi1>
    %13 = arith.xori %9, %12 : vector<4x384xi1>
    %14 = arith.andi %13, %7 : vector<4x384xi1>
    %15 = vector.broadcast %3 : i32 to vector<4x384xi32>
    %16 = arith.addi %5, %15 : vector<4x384xi32>
    %17 = arith.select %14, %16, %5 : vector<4x384xi1>, vector<4x384xi32>
    %cst = arith.constant 1.000000e+00 : f32
    %18 = vector.broadcast %cst : f32 to vector<1x384xf32>
    %c0_4 = arith.constant 0 : index
    %c0_5 = arith.constant 0 : index
    %c0_6 = arith.constant 0 : index
    %19 = vector.load %arg1[%c0_4, %c0_5, %c0_6] : memref<2x4x384xf32, #tpu.memory_space<vmem>>, vector<1x4x384xf32>
    %20 = vector.shape_cast %19 : vector<1x4x384xf32> to vector<4x384xf32>
    %c1_i32_7 = arith.constant 1 : i32
    %21 = tpu.dynamic_rotate %20 by %c1_i32_7 dim 1 : vector<4x384xf32>, i32 -> vector<4x384xf32>
    %c1_i32_8 = arith.constant 1 : i32
    %22 = vector.broadcast %c1_i32_8 : i32 to vector<4x384xi32>
    %23 = arith.cmpi slt, %17, %22 : vector<4x384xi32>
    %24 = arith.select %23, %20, %21 : vector<4x384xi1>, vector<4x384xf32>
    %c383_i32 = arith.constant 383 : i32
    %25 = tpu.dynamic_rotate %20 by %c383_i32 dim 1 : vector<4x384xf32>, i32 -> vector<4x384xf32>
    %c15_i32 = arith.constant 15 : i32
    %26 = vector.broadcast %c15_i32 : i32 to vector<4x384xi32>
    %27 = arith.cmpi sge, %17, %26 : vector<4x384xi32>
    %28 = arith.select %27, %20, %25 : vector<4x384xi1>, vector<4x384xf32>
    %c368_i32 = arith.constant 368 : i32
    %29 = tpu.dynamic_rotate %20 by %c368_i32 dim 1 : vector<4x384xf32>, i32 -> vector<4x384xf32>
    %c369_i32 = arith.constant 369 : i32
    %30 = tpu.dynamic_rotate %20 by %c369_i32 dim 1 : vector<4x384xf32>, i32 -> vector<4x384xf32>
    %c1_i32_9 = arith.constant 1 : i32
    %31 = vector.broadcast %c1_i32_9 : i32 to vector<4x384xi32>
    %32 = arith.cmpi slt, %17, %31 : vector<4x384xi32>
    %33 = arith.select %32, %29, %30 : vector<4x384xi1>, vector<4x384xf32>
    %c367_i32 = arith.constant 367 : i32
    %34 = tpu.dynamic_rotate %20 by %c367_i32 dim 1 : vector<4x384xf32>, i32 -> vector<4x384xf32>
    %c15_i32_10 = arith.constant 15 : i32
    %35 = vector.broadcast %c15_i32_10 : i32 to vector<4x384xi32>
    %36 = arith.cmpi sge, %17, %35 : vector<4x384xi32>
    %37 = arith.select %36, %29, %34 : vector<4x384xi1>, vector<4x384xf32>
    %c352_i32 = arith.constant 352 : i32
    %38 = tpu.dynamic_rotate %20 by %c352_i32 dim 1 : vector<4x384xf32>, i32 -> vector<4x384xf32>
    %c353_i32 = arith.constant 353 : i32
    %39 = tpu.dynamic_rotate %20 by %c353_i32 dim 1 : vector<4x384xf32>, i32 -> vector<4x384xf32>
    %c1_i32_11 = arith.constant 1 : i32
    %40 = vector.broadcast %c1_i32_11 : i32 to vector<4x384xi32>
    %41 = arith.cmpi slt, %17, %40 : vector<4x384xi32>
    %42 = arith.select %41, %38, %39 : vector<4x384xi1>, vector<4x384xf32>
    %c351_i32 = arith.constant 351 : i32
    %43 = tpu.dynamic_rotate %20 by %c351_i32 dim 1 : vector<4x384xf32>, i32 -> vector<4x384xf32>
    %c15_i32_12 = arith.constant 15 : i32
    %44 = vector.broadcast %c15_i32_12 : i32 to vector<4x384xi32>
    %45 = arith.cmpi sge, %17, %44 : vector<4x384xi32>
    %46 = arith.select %45, %38, %43 : vector<4x384xi1>, vector<4x384xf32>
    %47 = tpu.concatenate %24, %20, %28, %33, %29, %37, %42, %38, %46, %18 in 0 : vector<4x384xf32>, vector<4x384xf32>, vector<4x384xf32>, vector<4x384xf32>, vector<4x384xf32>, vector<4x384xf32>, vector<4x384xf32>, vector<4x384xf32>, vector<4x384xf32>, vector<1x384xf32> -> vector<37x384xf32>
    %cst_13 = arith.constant dense<0.000000e+00> : vector<8x384xf32>
    %48 = tpu.matmul %0, %47, %cst_13 {dimension_numbers = #tpu.dot_dimension_numbers<[1], [0], [0], [1], [0, 0, 1, 1], [], []>} : vector<8x37xf32>, vector<37x384xf32>, vector<8x384xf32> -> vector<8x384xf32>
    %49 = vector.extract_strided_slice %48 {offsets = [0, 0], sizes = [8, 256], strides = [1, 1]} : vector<8x384xf32> to vector<8x256xf32>
    %c0_14 = arith.constant 0 : index
    %c0_15 = arith.constant 0 : index
    %c0_16 = arith.constant 0 : index
    %50 = vector.load %arg3[%c0_14, %c0_15, %c0_16] : memref<2x8x256xf32, #tpu.memory_space<vmem>>, vector<1x8x256xf32>
    %51 = vector.shape_cast %50 : vector<1x8x256xf32> to vector<8x256xf32>
    %52 = vector.shape_cast %49 : vector<8x256xf32> to vector<1x8x256xf32>
    tpu.vector_store %arg3[%c0_14, %c0_15, %c0_16], %52 {strides = array<i32>} : memref<2x8x256xf32, #tpu.memory_space<vmem>>, vector<1x8x256xf32>,
    %c1 = arith.constant 1 : index
    %c0_17 = arith.constant 0 : index
    %c0_18 = arith.constant 0 : index
    %53 = vector.load %arg1[%c1, %c0_17, %c0_18] : memref<2x4x384xf32, #tpu.memory_space<vmem>>, vector<1x4x384xf32>
    %54 = vector.shape_cast %53 : vector<1x4x384xf32> to vector<4x384xf32>
    %c1_i32_19 = arith.constant 1 : i32
    %55 = tpu.dynamic_rotate %54 by %c1_i32_19 dim 1 : vector<4x384xf32>, i32 -> vector<4x384xf32>
    %c1_i32_20 = arith.constant 1 : i32
    %56 = vector.broadcast %c1_i32_20 : i32 to vector<4x384xi32>
    %57 = arith.cmpi slt, %17, %56 : vector<4x384xi32>
    %58 = arith.select %57, %54, %55 : vector<4x384xi1>, vector<4x384xf32>
    %c383_i32_21 = arith.constant 383 : i32
    %59 = tpu.dynamic_rotate %54 by %c383_i32_21 dim 1 : vector<4x384xf32>, i32 -> vector<4x384xf32>
    %c15_i32_22 = arith.constant 15 : i32
    %60 = vector.broadcast %c15_i32_22 : i32 to vector<4x384xi32>
    %61 = arith.cmpi sge, %17, %60 : vector<4x384xi32>
    %62 = arith.select %61, %54, %59 : vector<4x384xi1>, vector<4x384xf32>
    %c368_i32_23 = arith.constant 368 : i32
    %63 = tpu.dynamic_rotate %54 by %c368_i32_23 dim 1 : vector<4x384xf32>, i32 -> vector<4x384xf32>
    %c369_i32_24 = arith.constant 369 : i32
    %64 = tpu.dynamic_rotate %54 by %c369_i32_24 dim 1 : vector<4x384xf32>, i32 -> vector<4x384xf32>
    %c1_i32_25 = arith.constant 1 : i32
    %65 = vector.broadcast %c1_i32_25 : i32 to vector<4x384xi32>
    %66 = arith.cmpi slt, %17, %65 : vector<4x384xi32>
    %67 = arith.select %66, %63, %64 : vector<4x384xi1>, vector<4x384xf32>
    %c367_i32_26 = arith.constant 367 : i32
    %68 = tpu.dynamic_rotate %54 by %c367_i32_26 dim 1 : vector<4x384xf32>, i32 -> vector<4x384xf32>
    %c15_i32_27 = arith.constant 15 : i32
    %69 = vector.broadcast %c15_i32_27 : i32 to vector<4x384xi32>
    %70 = arith.cmpi sge, %17, %69 : vector<4x384xi32>
    %71 = arith.select %70, %63, %68 : vector<4x384xi1>, vector<4x384xf32>
    %c352_i32_28 = arith.constant 352 : i32
    %72 = tpu.dynamic_rotate %54 by %c352_i32_28 dim 1 : vector<4x384xf32>, i32 -> vector<4x384xf32>
    %c353_i32_29 = arith.constant 353 : i32
    %73 = tpu.dynamic_rotate %54 by %c353_i32_29 dim 1 : vector<4x384xf32>, i32 -> vector<4x384xf32>
    %c1_i32_30 = arith.constant 1 : i32
    %74 = vector.broadcast %c1_i32_30 : i32 to vector<4x384xi32>
    %75 = arith.cmpi slt, %17, %74 : vector<4x384xi32>
    %76 = arith.select %75, %72, %73 : vector<4x384xi1>, vector<4x384xf32>
    %c351_i32_31 = arith.constant 351 : i32
    %77 = tpu.dynamic_rotate %54 by %c351_i32_31 dim 1 : vector<4x384xf32>, i32 -> vector<4x384xf32>
    %c15_i32_32 = arith.constant 15 : i32
    %78 = vector.broadcast %c15_i32_32 : i32 to vector<4x384xi32>
    %79 = arith.cmpi sge, %17, %78 : vector<4x384xi32>
    %80 = arith.select %79, %72, %77 : vector<4x384xi1>, vector<4x384xf32>
    %81 = tpu.concatenate %58, %54, %62, %67, %63, %71, %76, %72, %80, %18 in 0 : vector<4x384xf32>, vector<4x384xf32>, vector<4x384xf32>, vector<4x384xf32>, vector<4x384xf32>, vector<4x384xf32>, vector<4x384xf32>, vector<4x384xf32>, vector<4x384xf32>, vector<1x384xf32> -> vector<37x384xf32>
    %cst_33 = arith.constant dense<0.000000e+00> : vector<8x384xf32>
    %82 = tpu.matmul %0, %81, %cst_33 {dimension_numbers = #tpu.dot_dimension_numbers<[1], [0], [0], [1], [0, 0, 1, 1], [], []>} : vector<8x37xf32>, vector<37x384xf32>, vector<8x384xf32> -> vector<8x384xf32>
    %83 = vector.extract_strided_slice %82 {offsets = [0, 0], sizes = [8, 256], strides = [1, 1]} : vector<8x384xf32> to vector<8x256xf32>
    %c1_34 = arith.constant 1 : index
    %c0_35 = arith.constant 0 : index
    %c0_36 = arith.constant 0 : index
    %84 = vector.load %arg3[%c1_34, %c0_35, %c0_36] : memref<2x8x256xf32, #tpu.memory_space<vmem>>, vector<1x8x256xf32>
    %85 = vector.shape_cast %84 : vector<1x8x256xf32> to vector<8x256xf32>
    %86 = vector.shape_cast %83 : vector<8x256xf32> to vector<1x8x256xf32>
    tpu.vector_store %arg3[%c1_34, %c0_35, %c0_36], %86 {strides = array<i32>} : memref<2x8x256xf32, #tpu.memory_space<vmem>>, vector<1x8x256xf32>,
    return
  }
  func.func @transform_0(%arg0: i32) -> (i32, i32, i32) {
    %c0_i32 = arith.constant 0 : i32
    %c0_i32_0 = arith.constant 0 : i32
    %c0_i32_1 = arith.constant 0 : i32
    return %arg0, %c0_i32, %c0_i32_0 : i32, i32, i32
  }
  func.func @transform_1(%arg0: i32) -> (i32, i32) {
    %c0_i32 = arith.constant 0 : i32
    %c0_i32_0 = arith.constant 0 : i32
    %c0_i32_1 = arith.constant 0 : i32
    return %c0_i32, %c0_i32_0 : i32, i32
  }
  func.func @transform_2(%arg0: i32) -> (i32, i32, i32) {
    %c0_i32 = arith.constant 0 : i32
    %c0_i32_0 = arith.constant 0 : i32
    %c0_i32_1 = arith.constant 0 : i32
    return %arg0, %c0_i32, %c0_i32_0 : i32, i32, i32
  }
}

</mosaic_0001>

<bundles_post_ra>
// kernel: tpu_custom_call.1
= control target key start
LH: loop header
LB: loop body
LE: loop exit
PB: predicated region body
PF: predicated region fallthrough
CT: control target
= control target key end

     0   :  { %7 = vsyncpa [#allocation3], 0  ;;  %s858_s0 = inlined_call_operand.hbm [shape: f32[2,4,384], index: 0, kind: input, shape index: {}]   ;;  %s859_s1 = inlined_call_operand.hbm [shape: f32[8,37], index: 1, kind: input, shape index: {}]   ;;  %s860_s2 = inlined_call_operand.hbm [shape: f32[2,8,256], index: 2, kind: output, shape index: {}]  }
   0x1   :  { %8 = vsyncpa [#allocation6], 0 }
   0x2   :  { %9 = vsyncpa [#allocation4], 0  ;;  %s576_s9 = smov [#allocation2]  }
   0x3   :  { %s15_s10 = sshll.u32 %s576_s9, 4  ;;  %s16_s10 = int_to_ptr.vmem [resolvable:$true] %s15_s10 }
   0x4   :  { %s518_s11 = scalar_lea.vmem %s16_s10, 384  ;;  %p523_p1 = scmp.lt.s32.totalorder %s16_s10, %s16_s10 }
   0x5   :  { %p519_p0 = scmp.ne.s32.totalorder %s16_s10, %s518_s11  ;;  %p524_p2 = scmp.lt.s32.totalorder %s518_s11, %s518_s11 }
   0x7   :  { %p525_p3 = por %p524_p2, %p523_p1 }
   0x9   :  { %p526_p4 = pnand %p525_p3, %p519_p0 }
   0xb   :  { %529 = shalt.err (!%p526_p4)
}
   0xc   :  { %s577_s12 = smov 192   ;;  %s578_s13 = smov 12  }
   0xd   :  { %21 = dma.hbm_to_vmem [thread:$0]  %s858_s0, 384, %s16_s10, [#allocation3], %s577_s12, %s577_s12, %s578_s13  }
   0xe   :  { %s579_s16 = smov [#allocation5]  }
   0xf   :  { %s28_s17 = sshll.u32 %s579_s16, 4  ;;  %s29_s17 = int_to_ptr.vmem [resolvable:$true] %s28_s17 }
  0x10   :  { %s538_s18 = scalar_lea.vmem %s29_s17, 128  ;;  %p543_p6 = scmp.lt.s32.totalorder %s29_s17, %s29_s17 }
  0x11   :  { %p539_p5 = scmp.ne.s32.totalorder %s29_s17, %s538_s18  ;;  %p544_p7 = scmp.lt.s32.totalorder %s538_s18, %s538_s18 }
  0x13   :  { %p545_p8 = por %p544_p7, %p543_p6 }
  0x15   :  { %p546_p9 = pnand %p545_p8, %p539_p5 }
  0x17   :  { %549 = shalt.err (!%p546_p9)
}
  0x18   :  { %31 = dma.hbm_to_vmem [thread:$0]  %s859_s1, 128, %s29_s17, [#allocation6]  }
  0x19   :  { %570 = dma.done.wait [#allocation3], 384  }
  0x1a   :  { %571 = vsyncadd [#allocation3], 4294966912 }
  0x1b   :  { %572 = dma.done.wait [#allocation6], 128  }
  0x1c   :  { %573 = vsyncadd [#allocation6], 4294967168  ;;  %v613_v0 = vld [vmem:[#allocation2 + $0x8] sm:$0xf]  ;;  %v615_v1 = vld [vmem:[#allocation2] sm:$0xff]  ;;  %s580_s0 = smov 95   ;;  %v39_v7 = vlaneseq }
  0x1d   :  { %152 = vrot.lane.b32.xlu1 %v613_v0, %s580_s0  ;;  %s581_s21 = smov 96   ;;  %v621_v2 = vcombine.high %v615_v1, %v615_v1  ;;  %v276_v3 = vld [vmem:[#allocation2 + $0x14] sm:$0xf]  ;;  %v623_v4 = vld [vmem:[#allocation2 + $0xc] sm:$0xff]  ;;  %s582_s1 = smov 112   ;;  %v587_v6 = vmov 0.0  }
  0x1e   :  { %132 = vrot.lane.b32.xlu0 %v613_v0, %s581_s21  ;;  %v628_v5 = vcombine.high %v623_v4, %v623_v4  ;;  %s583_s22 = smov 111   ;;  %s584_s23 = smov 97   ;;  %265 = vmatprep.mubr.f32.mxu0 %v587_v6  ;;  %v667_v8 = vand.u32 127, %v39_v7  ;;  %vm179_vm3 = vcmask 1043456   ;;  %vm194_vm4 = vcmask 1044480  }
  0x1f   :  { %s585_s24 = smov 113   ;;  %s586_s25 = smov 127   ;;  %456 = vmatprep.mubr.f32.mxu1 %v587_v6  ;;  %vm190_vm14 = vcmask 302080  }
  0x20   :  { %s588_s26 = smov 1   ;;  %v41_v9 = vadd.s32 128, %v667_v8  ;;  %vm134_vm0 = vcmp.lt.s32.totalorder %v667_v8, 96  ;;  %vm154_vm1 = vcmp.lt.s32.totalorder %v667_v8, 95  ;;  %v46_v22 = vand.u32 15, %v667_v8  ;;  %s589_s27 = smov [#allocation7]  }
  0x21   :  { %332 = vrot.lane.b32.xlu1 %v276_v3, %s581_s21  ;;  %vm143_vm6 = vcmp.lt.s32.totalorder %v667_v8, 97  ;;  %vm123_vm8 = vcmp.lt.s32.totalorder %v667_v8, 111  ;;  %vm103_vm9 = vcmp.lt.s32.totalorder %v667_v8, 112  ;;  %vm112_vm11 = vcmp.lt.s32.totalorder %v667_v8, 113  ;;  %s471_s28 = sshll.u32 %s589_s27, 4  ;;  %s472_s28 = int_to_ptr.vmem [resolvable:$true] %s471_s28 }
  0x22   :  { %130 = vrot.lane.b32.xlu0 %v621_v2, %s581_s21  ;;  %v53_v12 = vand.u32 15, %v41_v9  ;;  %vm692_vm5 = vcmp.ge.s32.totalorder %v46_v22, 15  ;;  %vm750_vm10 = vcmp.lt.s32.totalorder %v46_v22, 1  ;;  %vm90_vm12 = vcmp.lt.s32.totalorder %v667_v8, 127  ;;  %s550_s29 = scalar_lea.vmem %s472_s28, 512  ;;  %p555_p11 = scmp.lt.s32.totalorder %s472_s28, %s472_s28 }
  0x23   :  { %vm77_vm13 = vcmp.lt.s32.totalorder %v667_v8, 1  ;;  %p551_p10 = scmp.ne.s32.totalorder %s472_s28, %s550_s29  ;;  %p556_p12 = scmp.lt.s32.totalorder %s550_s29, %s550_s29 }
  0x24   :  { %vm672_vm2 = vcmp.ge.s32.totalorder %v53_v12, 15  ;;  %vm717_vm7 = vcmp.lt.s32.totalorder %v53_v12, 1 }
  0x25   :  { %150 = vrot.lane.b32.xlu1 %v621_v2, %s580_s0  ;;  %p557_p13 = por %p556_p12, %p555_p11 }
  0x26   :  { %330 = vrot.lane.b32.xlu0 %v628_v5, %s581_s21 }
  0x27   :  { %p558_p0 = pnand %p557_p13, %p551_p10 }
  0x29   :  { %350 = vrot.lane.b32.xlu1 %v276_v3, %s580_s0 }
  0x2a   :  { %348 = vrot.lane.b32.xlu0 %v628_v5, %s580_s0 }
  0x2d   :  { %148 = vrot.lane.b32.xlu1 %v615_v1, %s580_s0 }
  0x2e   :  { %128 = vrot.lane.b32.xlu0 %v615_v1, %s581_s21 }
  0x31   :  { %346 = vrot.lane.b32.xlu1 %v623_v4, %s580_s0 }
  0x32   :  { %328 = vrot.lane.b32.xlu0 %v623_v4, %s581_s21 }
  0x35   :  { %101 = vrot.lane.b32.xlu1 %v613_v0, %s582_s1 }
  0x36   :  { %99 = vrot.lane.b32.xlu0 %v621_v2, %s582_s1 }
  0x39   :  { %121 = vrot.lane.b32.xlu1 %v613_v0, %s583_s22 }
  0x3a   :  { %119 = vrot.lane.b32.xlu0 %v621_v2, %s583_s22 }
  0x3d   :  { %141 = vrot.lane.b32.xlu1 %v613_v0, %s584_s23 }
  0x3e   :  { %139 = vrot.lane.b32.xlu0 %v621_v2, %s584_s23 }
  0x41   :  { %304 = vrot.lane.b32.xlu1 %v276_v3, %s582_s1 }
  0x42   :  { %302 = vrot.lane.b32.xlu0 %v628_v5, %s582_s1 }
  0x45   :  { %322 = vrot.lane.b32.xlu1 %v276_v3, %s583_s22 }
  0x46   :  { %320 = vrot.lane.b32.xlu0 %v628_v5, %s583_s22 }
  0x49   :  { %340 = vrot.lane.b32.xlu1 %v276_v3, %s584_s23 }
  0x4a   :  { %338 = vrot.lane.b32.xlu0 %v628_v5, %s584_s23 }
  0x4d   :  { %117 = vrot.lane.b32.xlu1 %v615_v1, %s583_s22 }
  0x4e   :  { %97 = vrot.lane.b32.xlu0 %v615_v1, %s582_s1 }
  0x51   :  { %300 = vrot.lane.b32.xlu1 %v623_v4, %s582_s1 }
  0x52   :  { %137 = vrot.lane.b32.xlu0 %v615_v1, %s584_s23 }
  0x55   :  { %336 = vrot.lane.b32.xlu1 %v623_v4, %s584_s23 }
  0x56   :  { %318 = vrot.lane.b32.xlu0 %v623_v4, %s583_s22 }
  0x59   :  { %110 = vrot.lane.b32.xlu1 %v613_v0, %s585_s24 }
  0x5a   :  { %108 = vrot.lane.b32.xlu0 %v621_v2, %s585_s24 }
  0x5d   :  { %312 = vrot.lane.b32.xlu1 %v276_v3, %s585_s24 }
  0x5e   :  { %310 = vrot.lane.b32.xlu0 %v628_v5, %s585_s24 }
  0x61   :  { %308 = vrot.lane.b32.xlu1 %v623_v4, %s585_s24 }
  0x62   :  { %106 = vrot.lane.b32.xlu0 %v615_v1, %s585_s24 }
  0x65   :  { %88 = vrot.lane.b32.xlu1 %v613_v0, %s586_s25 }
  0x66   :  { %86 = vrot.lane.b32.xlu0 %v621_v2, %s586_s25 }
  0x69   :  { %294 = vrot.lane.b32.xlu1 %v276_v3, %s586_s25 }
  0x6a   :  { %292 = vrot.lane.b32.xlu0 %v628_v5, %s586_s25 }
  0x6d   :  { %290 = vrot.lane.b32.xlu1 %v623_v4, %s586_s25 }
  0x6e   :  { %84 = vrot.lane.b32.xlu0 %v615_v1, %s586_s25 }
  0x71   :  { %73 = vrot.lane.b32.xlu1 %v621_v2, %s588_s26 }
  0x72   :  { %71 = vrot.lane.b32.xlu0 %v615_v1, %s588_s26 }
  0x75   :  { %282 = vrot.lane.b32.xlu1 %v628_v5, %s588_s26 }
  0x76   :  { %280 = vrot.lane.b32.xlu0 %v623_v4, %s588_s26 }
  0x79   :  { %284 = vrot.lane.b32.xlu1 %v276_v3, %s588_s26 }
  0x7a   :  { %75 = vrot.lane.b32.xlu0 %v613_v0, %s588_s26 }
  0x8f   :  { %v153_v10 = vpop.permute.xlu1 %152 }
  0x90   :  { %v133_v11 = vpop.permute.xlu0 %132 }
  0x93   :  { %v333_v13 = vpop.permute.xlu1 %332 }
  0x94   :  { %v131_v14 = vpop.permute.xlu0 %130 }
  0x95   :  { %v135_v18 = vsel %vm134_vm0, %v131_v14, %v133_v11 }
  0x96   :  { %v176_v49 = vrot.slane %v135_v18, 4 }
  0x97   :  { %v151_v16 = vpop.permute.xlu1 %150 }
  0x98   :  { %v331_v17 = vpop.permute.xlu0 %330  ;;  %v155_v19 = vsel %vm154_vm1, %v151_v16, %v153_v10 }
  0x99   :  { %v158_v20 = vsel %vm672_vm2, %v135_v18, %v155_v19  ;;  %v334_v25 = vsel %vm134_vm0, %v331_v17, %v333_v13 }
  0x9a   :  { %v189_v21 = vsel %vm179_vm3, %v158_v20, 1.0  ;;  %v373_v59 = vrot.slane %v334_v25, 4 }
  0x9b   :  { %v351_v23 = vpop.permute.xlu1 %350  ;;  %484 = vmatprep.subr.msk.mxu0 %vm194_vm4, %v189_v21 }
  0x9c   :  { %v349_v24 = vpop.permute.xlu0 %348 }
  0x9d   :  { %v352_v26 = vsel %vm154_vm1, %v349_v24, %v351_v23 }
  0x9e   :  { %v355_v27 = vsel %vm672_vm2, %v334_v25, %v352_v26 }
  0x9f   :  { %v385_v28 = vsel %vm179_vm3, %v355_v27, 1.0  ;;  %v149_v30 = vpop.permute.xlu1 %148 }
  0xa0   :  { %487 = vmatprep.subr.msk.mxu1 %vm194_vm4, %v385_v28  ;;  %v129_v31 = vpop.permute.xlu0 %128  ;;  %v156_v32 = vsel %vm154_vm1, %v149_v30, %v151_v16 }
  0xa1   :  { %v136_v33 = vsel %vm134_vm0, %v129_v31, %v131_v14 }
  0xa2   :  { %v157_v34 = vsel %vm692_vm5, %v136_v33, %v156_v32  ;;  %v175_v19 = vrot.slane %v136_v33, 4 }
  0xa3   :  { %v188_v35 = vsel %vm179_vm3, %v157_v34, 1.0  ;;  %v347_v36 = vpop.permute.xlu1 %346 }
  0xa4   :  { %485 = vmatpush1.msk.msra.mxu0 %vm194_vm4, %v188_v35  ;;  %v329_v37 = vpop.permute.xlu0 %328  ;;  %v353_v38 = vsel %vm154_vm1, %v347_v36, %v349_v24 }
  0xa5   :  { %v709_v39 = vsel %vm134_vm0, %v329_v37, %v331_v17 }
  0xa6   :  { %v354_v40 = vsel %vm692_vm5, %v709_v39, %v353_v38 }
  0xa7   :  { %v384_v41 = vsel %vm179_vm3, %v354_v40, 1.0  ;;  %v102_v42 = vpop.permute.xlu1 %101 }
  0xa8   :  { %488 = vmatpush1.msk.msra.mxu1 %vm194_vm4, %v384_v41  ;;  %v100_v43 = vpop.permute.xlu0 %99 }
  0xa9   :  { %v104_v0 = vsel %vm103_vm9, %v100_v43, %v102_v42 }
  0xab   :  { %v122_v44 = vpop.permute.xlu1 %121 }
  0xac   :  { %v120_v45 = vpop.permute.xlu0 %119 }
  0xad   :  { %v124_v61 = vsel %vm123_vm8, %v120_v45, %v122_v44 }
  0xae   :  { %v127_v7 = vsel %vm672_vm2, %v104_v0, %v124_v61 }
  0xaf   :  { %v142_v47 = vpop.permute.xlu1 %141  ;;  %v170_v14 = vrot.slane %v127_v7, 4 }
  0xb0   :  { %v140_v48 = vpop.permute.xlu0 %139 }
  0xb1   :  { %v144_v50 = vsel %vm143_vm6, %v140_v48, %v142_v47  ;;  %v185_v30 = vsel %vm179_vm3, %v104_v0, %v170_v14 }
  0xb2   :  { %v147_v51 = vsel %vm717_vm7, %v135_v18, %v144_v50 }
  0xb3   :  { %v187_v52 = vsel %vm179_vm3, %v147_v51, %v176_v49  ;;  %v305_v53 = vpop.permute.xlu1 %304 }
  0xb4   :  { %225 = vmatprep.subr.mxu0 %v187_v52  ;;  %v303_v54 = vpop.permute.xlu0 %302 }
  0xb5   :  { %v306_v16 = vsel %vm103_vm9, %v303_v54, %v305_v53 }
  0xb7   :  { %v323_v55 = vpop.permute.xlu1 %322 }
  0xb8   :  { %v321_v56 = vpop.permute.xlu0 %320 }
  0xb9   :  { %v324_v11 = vsel %vm123_vm8, %v321_v56, %v323_v55 }
  0xba   :  { %v327_v20 = vsel %vm672_vm2, %v306_v16, %v324_v11 }
  0xbb   :  { %v341_v57 = vpop.permute.xlu1 %340  ;;  %v367_v26 = vrot.slane %v327_v20, 4 }
  0xbc   :  { %v339_v58 = vpop.permute.xlu0 %338 }
  0xbd   :  { %v342_v60 = vsel %vm143_vm6, %v339_v58, %v341_v57  ;;  %v381_v42 = vsel %vm179_vm3, %v306_v16, %v367_v26 }
  0xbe   :  { %v345_v62 = vsel %vm717_vm7, %v334_v25, %v342_v60  ;;  %v372_v25 = vrot.slane %v709_v39, 4 }
  0xbf   :  { %v383_v63 = vsel %vm179_vm3, %v345_v62, %v373_v59  ;;  %v118_v3 = vpop.permute.xlu1 %117 }
  0xc0   :  { %416 = vmatprep.subr.mxu1 %v383_v63  ;;  %v98_v6 = vpop.permute.xlu0 %97  ;;  %v125_v9 = vsel %vm123_vm8, %v118_v3, %v120_v45 }
  0xc1   :  { %v743_v10 = vsel %vm103_vm9, %v98_v6, %v100_v43 }
  0xc2   :  { %v126_v12 = vsel %vm692_vm5, %v743_v10, %v125_v9 }
  0xc3   :  { %v301_v17 = vpop.permute.xlu1 %300  ;;  %v169_v21 = vrot.slane %v126_v12, 4 }
  0xc4   :  { %v138_v18 = vpop.permute.xlu0 %137  ;;  %v307_v31 = vsel %vm103_vm9, %v301_v17, %v303_v54 }
  0xc5   :  { %v145_v23 = vsel %vm143_vm6, %v138_v18, %v140_v48 }
  0xc6   :  { %v146_v22 = vsel %vm750_vm10, %v136_v33, %v145_v23  ;;  %v184_v33 = vsel %vm179_vm3, %v743_v10, %v169_v21 }
  0xc7   :  { %v186_v24 = vsel %vm179_vm3, %v146_v22, %v175_v19  ;;  %v337_v27 = vpop.permute.xlu1 %336 }
  0xc8   :  { %226 = vmatpush1.msra.mxu0 %v186_v24  ;;  %v319_v28 = vpop.permute.xlu0 %318  ;;  %v343_v32 = vsel %vm143_vm6, %v337_v27, %v339_v58 }
  0xc9   :  { %v325_v34 = vsel %vm123_vm8, %v319_v28, %v321_v56  ;;  %227 = vmatprep.subr.mxu0 %v185_v30  ;;  %v344_v36 = vsel %vm750_vm10, %v709_v39, %v343_v32  ;;  %v159_v30 = vcombine.low %v615_v1, %v615_v1 }
  0xca   :  { %v326_v35 = vsel %vm692_vm5, %v307_v31, %v325_v34  ;;  %228 = vmatpush1.msra.mxu0 %v184_v33  ;;  %v382_v38 = vsel %vm179_vm3, %v344_v36, %v372_v25 }
  0xcb   :  { %v366_v37 = vrot.slane %v326_v35, 4  ;;  %v111_v40 = vpop.permute.xlu1 %110  ;;  %417 = vmatpush1.msra.mxu1 %v382_v38  ;;  %v38_v35 = vld [vmem:[#allocation5] sm:$0xff] }
  0xcc   :  { %v109_v41 = vpop.permute.xlu0 %108  ;;  %418 = vmatprep.subr.mxu1 %v381_v42 }
  0xcd   :  { %v380_v43 = vsel %vm179_vm3, %v307_v31, %v366_v37  ;;  %v113_v47 = vsel %vm112_vm11, %v109_v41, %v111_v40 }
  0xce   :  { %419 = vmatpush1.msra.mxu1 %v380_v43  ;;  %v116_v49 = vsel %vm717_vm7, %v104_v0, %v113_v47 }
  0xcf   :  { %v313_v44 = vpop.permute.xlu1 %312  ;;  %v164_v53 = vrot.slane %v116_v49, 4 }
  0xd0   :  { %v311_v45 = vpop.permute.xlu0 %310 }
  0xd1   :  { %v314_v50 = vsel %vm112_vm11, %v311_v45, %v313_v44 }
  0xd2   :  { %v317_v55 = vsel %vm717_vm7, %v306_v16, %v314_v50 }
  0xd3   :  { %v309_v39 = vpop.permute.xlu1 %308  ;;  %v361_v62 = vrot.slane %v317_v55, 4 }
  0xd4   :  { %v107_v48 = vpop.permute.xlu0 %106  ;;  %v315_v57 = vsel %vm112_vm11, %v309_v39, %v311_v45 }
  0xd5   :  { %v114_v58 = vsel %vm112_vm11, %v107_v48, %v109_v41  ;;  %v316_v0 = vsel %vm750_vm10, %v307_v31, %v315_v57 }
  0xd6   :  { %v115_v3 = vsel %vm750_vm10, %v743_v10, %v114_v58  ;;  %v360_v12 = vrot.slane %v316_v0, 4 }
  0xd7   :  { %v89_v51 = vpop.permute.xlu1 %88  ;;  %v163_v14 = vrot.slane %v115_v3, 4 }
  0xd8   :  { %v87_v52 = vpop.permute.xlu0 %86 }
  0xd9   :  { %v91_v54 = vsel %vm90_vm12, %v87_v52, %v89_v51 }
  0xda   :  { %v96_v56 = vsel %vm672_vm2, %v621_v2, %v91_v54 }
  0xdb   :  { %v183_v59 = vsel %vm179_vm3, %v96_v56, %v164_v53  ;;  %v295_v60 = vpop.permute.xlu1 %294 }
  0xdc   :  { %229 = vmatprep.subr.mxu0 %v183_v59  ;;  %v293_v61 = vpop.permute.xlu0 %292 }
  0xdd   :  { %v296_v63 = vsel %vm90_vm12, %v293_v61, %v295_v60 }
  0xde   :  { %v299_v6 = vsel %vm672_vm2, %v628_v5, %v296_v63 }
  0xdf   :  { %v379_v7 = vsel %vm179_vm3, %v299_v6, %v361_v62  ;;  %v291_v9 = vpop.permute.xlu1 %290 }
  0xe0   :  { %420 = vmatprep.subr.mxu1 %v379_v7  ;;  %v85_v11 = vpop.permute.xlu0 %84  ;;  %v297_v16 = vsel %vm90_vm12, %v291_v9, %v293_v61 }
  0xe1   :  { %v92_v17 = vsel %vm90_vm12, %v85_v11, %v87_v52  ;;  %v298_v15 = vsel %vm692_vm5, %v623_v4, %v297_v16 }
  0xe2   :  { %v95_v10 = vsel %vm692_vm5, %v615_v1, %v92_v17  ;;  %v378_v19 = vsel %vm179_vm3, %v298_v15, %v360_v12 }
  0xe3   :  { %v182_v18 = vsel %vm179_vm3, %v95_v10, %v163_v14  ;;  %v74_v20 = vpop.permute.xlu1 %73  ;;  %421 = vmatpush1.msra.mxu1 %v378_v19 }
  0xe4   :  { %230 = vmatpush1.msra.mxu0 %v182_v18  ;;  %v72_v21 = vpop.permute.xlu0 %71 }
  0xe5   :  { %v78_v23 = vsel %vm77_vm13, %v72_v21, %v74_v20 }
  0xe6   :  { %v83_v22 = vsel %vm717_vm7, %v621_v2, %v78_v23  ;;  %v356_v2 = vcombine.low %v623_v4, %v623_v4 }
  0xe7   :  { %v181_v29 = vsel %vm179_vm3, %v83_v22, %v615_v1  ;;  %v283_v24 = vpop.permute.xlu1 %282 }
  0xe8   :  { %231 = vmatprep.subr.mxu0 %v181_v29  ;;  %v281_v25 = vpop.permute.xlu0 %280 }
  0xe9   :  { %v286_v26 = vsel %vm77_vm13, %v281_v25, %v283_v24 }
  0xea   :  { %v289_v27 = vsel %vm717_vm7, %v628_v5, %v286_v26 }
  0xeb   :  { %v377_v28 = vsel %vm179_vm3, %v289_v27, %v623_v4  ;;  %v285_v31 = vpop.permute.xlu1 %284 }
  0xec   :  { %422 = vmatprep.subr.mxu1 %v377_v28  ;;  %v76_v32 = vpop.permute.xlu0 %75  ;;  %v287_v34 = vsel %vm77_vm13, %v285_v31, %v281_v25 }
  0xed   :  { %v79_v33 = vsel %vm77_vm13, %v76_v32, %v72_v21  ;;  %v288_v46 = vsel %vm750_vm10, %v623_v4, %v287_v34 }
  0xee   :  { %v82_v5 = vsel %vm750_vm10, %v615_v1, %v79_v33  ;;  %v376_v37 = vsel %vm179_vm3, %v288_v46, %v356_v2 }
  0xef   :  { %v180_v36 = vsel %vm179_vm3, %v82_v5, %v159_v30  ;;  %423 = vmatpush1.msra.mxu1 %v376_v37 }
  0xf0   :  { %232 = vmatpush1.msra.mxu0 %v180_v36  ;;  %489 = vmatmul.mubr.msk.f32.vlgmr.msra.gmra.mxu1 %vm190_vm14, %v38_v35 }
  0xf1   :  { %486 = vmatmul.mubr.msk.f32.vlgmr.msra.gmra.mxu0 %vm190_vm14, %v38_v35 }
 0x1b0   :  { %v458_v38 = vpop.f32.mrf.mxu1 }
 0x1b1   :  { %v267_v8 = vpop.f32.mrf.mxu0  ;;  %464 = vst [vmem:[#allocation7 + $0x10] sm:$0xff] %v458_v38 }
 0x1b2   :  { %272 = vst [vmem:[#allocation7] sm:$0xff] %v267_v8  ;;  %v460_v13 = vpop.f32.mrf.mxu1 }
 0x1b3   :  { %v269_v1 = vpop.f32.mrf.mxu0  ;;  %465 = vst [vmem:[#allocation7 + $0x18] sm:$0xff] %v460_v13 }
 0x1b4   :  { %273 = vst [vmem:[#allocation7 + $0x8] sm:$0xff] %v269_v1 }
 0x1b5   :  { %561 = shalt.err (!%p558_p0)
}
 0x1b6   :  { %s590_s30 = smov 256   ;;  %s591_s3 = smov 16  }
 0x1b7   :  { %477 = dma.vmem_to_hbm [thread:$0]  %s472_s28, 512, %s860_s2, [#allocation4], %s590_s30, %s590_s30, %s591_s3  }
 0x1b8   :  { %574 = dma.done.wait [#allocation4], 512  }
 0x1b9   :  { %575 = vsyncadd [#allocation4], 4294966784 }
 0x1ba   :  { %481 = vsyncpa [#allocation3], 1 }
 0x1bb   :  { %482 = vsyncpa [#allocation6], 1 }
 0x1bc   :  { %483 = vsyncpa [#allocation4], 1 }

</bundles_post_ra>
